<compile_context>
chip_gen: v7x
topology: tpu7x:2x2x1
jax: 0.10.0
libtpu: 0.0.40
codegen_flags: <defaults>
</compile_context>

<pallas_src>
import functools
import math

import jax
import jax.numpy as jnp
from jax.experimental import pallas as pl
from jax.experimental.pallas import tpu as pltpu

_MIB = 1024 * 1024


def _round_up(x, m):
    return (x + m - 1) // m * m


def _pad2(a, rows, cols):
    r, c = a.shape
    if r == rows and c == cols:
        return a
    return jnp.pad(a, ((0, rows - r), (0, cols - c)))


@functools.lru_cache(maxsize=1)
def _hw_profile():
    """Per-generation (tm_max, tn_max, tk_max), vmem_limit_bytes."""
    try:
        cap = int(pltpu.get_tpu_info().vmem_capacity_bytes)
    except Exception:
        cap = 64 * _MIB  # conservative (v7x-like / unknown backend)
    if cap >= 100 * _MIB:
        # v5e / v6e: 128 MiB physical VMEM -> big tiles, generous scoped limit.
        return (1024, 1024, 1024), 96 * _MIB
    # v7x-class: 64 MiB physical VMEM per TensorCore.  With bf16 weights the
    # (512, 1024, 1024) training footprint is ~24 MiB (double-buffered), leaving
    # headroom below ~0.7 * capacity for compiler-internal scratch.
    return (512, 1024, 1024), min(int(cap * 0.7), 44 * _MIB)


def _choose_tiles(M, N, K, caps):
    tm_max, tn_max, tk_max = caps
    Mp = _round_up(M, 8)
    Np = _round_up(N, 128)
    Kp = _round_up(K, 128)
    tm = Mp if Mp <= tm_max else tm_max
    tn = Np if Np <= tn_max else tn_max
    tk = Kp if Kp <= tk_max else tk_max
    Mp = _round_up(Mp, tm)
    Np = _round_up(Np, tn)
    Kp = _round_up(Kp, tk)
    return (Mp, Np, Kp), (tm, tn, tk)


# --------------------------------------------------------------------------------------
# Kernels
# --------------------------------------------------------------------------------------
def _fc_gaussian_train_kernel(x_ref, wm_ref, wv_ref, eps_ref, o_ref, mean_acc, var_acc):
    """Training path: two bf16 MXU matmuls accumulated over K in f32, sqrt + noise fuse."""
    k = pl.program_id(2)
    k_last = pl.num_programs(2) - 1

    @pl.when(k == 0)
    def _init():
        mean_acc[...] = jnp.zeros_like(mean_acc)
        var_acc[...] = jnp.zeros_like(var_acc)

    x = x_ref[...]                                   # (tm, tk) f32
    x_bf = x.astype(jnp.bfloat16)
    x2_bf = (x * x).astype(jnp.bfloat16)             # square in f32, VPU work co-issues w/ MXU

    # Weights arrive pre-transposed to (in, out) in bf16 -> plain (tm,tk)@(tk,tn) MXU path,
    # no per-step transpose, no per-step exp.
    mean_acc[...] += jnp.dot(x_bf, wm_ref[...], preferred_element_type=jnp.float32)
    var_acc[...] += jnp.dot(x2_bf, wv_ref[...], preferred_element_type=jnp.float32)

    @pl.when(k == k_last)
    def _finalize():
        out = mean_acc[...] + jnp.sqrt(var_acc[...]) * eps_ref[...]
        o_ref[...] = out.astype(o_ref.dtype)


def _fc_deterministic_kernel(x_ref, wm_ref, o_ref, acc):
    """Eval path: plain tiled linear with the mean weight."""
    k = pl.program_id(2)
    k_last = pl.num_programs(2) - 1

    @pl.when(k == 0)
    def _init():
        acc[...] = jnp.zeros_like(acc)

    acc[...] += jnp.dot(x_ref[...].astype(jnp.bfloat16), wm_ref[...],
                        preferred_element_type=jnp.float32)

    @pl.when(k == k_last)
    def _finalize():
        o_ref[...] = acc[...].astype(o_ref.dtype)


# --------------------------------------------------------------------------------------
# Wrapper
# --------------------------------------------------------------------------------------
@functools.partial(jax.jit, static_argnames=("training", "out_dtype", "tile_caps"))
def fc_gaussian_forward(x, mean, logvar, key=None, *, training=True,
                        out_dtype=None, tile_caps=None):
    """x: (..., in_features); mean/logvar: (out_features, in_features) (PyTorch layout).

    key: jax PRNG key for the output-space noise (required when training=True).
    """
    orig_shape = x.shape
    in_features = orig_shape[-1]
    out_features = mean.shape[0]
    x2d = x.reshape(-1, in_features)
    M, K = x2d.shape
    N = out_features

    caps, vmem_limit = _hw_profile()
    if tile_caps is not None:
        caps = tile_caps
    (Mp, Np, Kp), (tm, tn, tk) = _choose_tiles(M, N, K, caps)
    grid = (Mp // tm, Np // tn, Kp // tk)

    if out_dtype is None:
        out_dtype = x.dtype
    obytes = jnp.dtype(out_dtype).itemsize
    xbytes = jnp.dtype(x.dtype).itemsize

    # Wrapper-side weight prep (one fused HBM pass; hoist if weights persist across steps):
    #   mean   -> bf16, transposed to (in, out)
    #   logvar -> exp() in f32 -> bf16, transposed to (in, out)   (= std**2)
    w_mean = mean.astype(jnp.float32).T.astype(jnp.bfloat16)
    # Zero padding is an exact no-op when already aligned; zero-padded rows/cols of the
    # weights and of x contribute nothing to the contraction.
    x_p = _pad2(x2d, Mp, Kp)
    wm_p = _pad2(w_mean, Kp, Np)

    out_shape = jax.ShapeDtypeStruct((Mp, Np), out_dtype)
    compiler_params = pltpu.CompilerParams(
        dimension_semantics=("parallel", "parallel", "arbitrary"),
        vmem_limit_bytes=vmem_limit)

    if training:
        if key is None:
            raise ValueError("training=True requires a PRNG key for the output noise")
        w_var = jnp.exp(logvar.astype(jnp.float32)).T.astype(jnp.bfloat16)
        wv_p = _pad2(w_var, Kp, Np)
        # eps generated at the logical (M, N) shape -> independent of tiling / padding /
        # TPU generation; padded region is sliced away.
        eps = jax.random.normal(key, (M, N), dtype=jnp.float32)
        eps_p = _pad2(eps, Mp, Np)

        cost = pl.CostEstimate(
            flops=4 * Mp * Np * Kp,
            transcendentals=Mp * Np,  # sqrt in the epilogue
            bytes_accessed=(xbytes * Mp * Kp * grid[1]       # x re-read per j
                            + 2 * 2 * Kp * Np * grid[0]      # two bf16 weight streams per i
                            + 4 * Mp * Np                    # eps
                            + obytes * Mp * Np))             # output
        grid_spec = pltpu.PrefetchScalarGridSpec(
            num_scalar_prefetch=0,
            grid=grid,
            in_specs=[
                pl.BlockSpec((tm, tk), lambda i, j, k: (i, k)),   # x
                pl.BlockSpec((tk, tn), lambda i, j, k: (k, j)),   # mean.T  (in, out) bf16
                pl.BlockSpec((tk, tn), lambda i, j, k: (k, j)),   # exp(logvar).T bf16
                pl.BlockSpec((tm, tn), lambda i, j, k: (i, j)),   # eps (constant over k)
            ],
            out_specs=pl.BlockSpec((tm, tn), lambda i, j, k: (i, j)),
            scratch_shapes=[pltpu.VMEM((tm, tn), jnp.float32),
                            pltpu.VMEM((tm, tn), jnp.float32)])
        out_p = pl.pallas_call(
            _fc_gaussian_train_kernel,
            out_shape=out_shape,
            grid_spec=grid_spec,
            compiler_params=compiler_params,
            cost_estimate=cost,
        )(x_p, wm_p, wv_p, eps_p)
    else:
        cost = pl.CostEstimate(
            flops=2 * Mp * Np * Kp,
            transcendentals=0,
            bytes_accessed=(xbytes * Mp * Kp * grid[1]
                            + 2 * Kp * Np * grid[0]
                            + obytes * Mp * Np))
        grid_spec = pltpu.PrefetchScalarGridSpec(
            num_scalar_prefetch=0,
            grid=grid,
            in_specs=[
                pl.BlockSpec((tm, tk), lambda i, j, k: (i, k)),   # x
                pl.BlockSpec((tk, tn), lambda i, j, k: (k, j)),   # mean.T (in, out) bf16
            ],
            out_specs=pl.BlockSpec((tm, tn), lambda i, j, k: (i, j)),
            scratch_shapes=[pltpu.VMEM((tm, tn), jnp.float32)])
        out_p = pl.pallas_call(
            _fc_deterministic_kernel,
            out_shape=out_shape,
            grid_spec=grid_spec,
            compiler_params=compiler_params,
            cost_estimate=cost,
        )(x_p, wm_p)

    out = out_p[:M, :N]
    return out.reshape(orig_shape[:-1] + (out_features,))


def init_fc_gaussian_params(key, in_features, out_features, gain=1.0):
    """Mirror of FCGaussian.__init__: xavier_uniform mean, zero logvar ((out, in) layout)."""
    a = gain * math.sqrt(6.0 / (in_features + out_features))
    mean = jax.random.uniform(
        key, (out_features, in_features), jnp.float32, minval=-a, maxval=a)
    logvar = jnp.zeros((out_features, in_features), jnp.float32)
    return mean, logvar


if __name__ == "__main__":
    root = jax.random.PRNGKey(0)
    k_w, k_x, k_e1, k_e2, k_w2, k_x2, k_e3 = jax.random.split(root, 7)
    bf16 = jnp.bfloat16

    # ---- Case 1: tile-aligned shapes -------------------------------------------------
    B, in_features, out_features = 16, 256, 256
    mean, logvar = init_fc_gaussian_params(k_w, in_features, out_features)
    logvar = logvar - 1.0                      # non-trivial exp(logvar) path
    x = jax.random.normal(k_x, (B, in_features), jnp.float32)

    out1 = jax.block_until_ready(fc_gaussian_forward(x, mean, logvar, k_e1, training=True))
    out2 = jax.block_until_ready(fc_gaussian_forward(x, mean, logvar, k_e1, training=True))
    out3 = jax.block_until_ready(fc_gaussian_forward(x, mean, logvar, k_e2, training=True))
    assert out1.shape == (B, out_features)
    assert bool(jnp.array_equal(out1, out2)), "same key must reproduce exactly"
    assert not bool(jnp.allclose(out1, out3)), "different key must change the noise"

    # Multi-step grid (forced small tiles) must agree with the single-tile result
    # (noise is independent of tiling; only f32 reduction-order differences remain).
    out_tiled = jax.block_until_ready(
        fc_gaussian_forward(x, mean, logvar, k_e1, training=True, tile_caps=(8, 128, 128)))
    assert bool(jnp.allclose(out1, out_tiled, atol=1e-3, rtol=1e-3))

    # Reference moments with the same bf16-operand / f32-accumulate numerics as the kernel.
    ref_mean = jnp.dot(x.astype(bf16), mean.T.astype(bf16),
                       preferred_element_type=jnp.float32)
    ref_var = jnp.dot((x * x).astype(bf16), jnp.exp(logvar).T.astype(bf16),
                      preferred_element_type=jnp.float32)
    ref_std = jnp.sqrt(ref_var)

    # out = ref_mean + ref_std * eps  =>  implied eps must look standard normal.
    z = (out1.astype(jnp.float32) - ref_mean) / ref_std
    assert bool(jnp.all(jnp.isfinite(z)))
    assert float(jnp.abs(jnp.mean(z))) < 0.2, f"noise mean off: {float(jnp.mean(z))}"
    assert abs(float(jnp.std(z)) - 1.0) < 0.2, f"noise std off: {float(jnp.std(z))}"
    assert float(jnp.max(jnp.abs(z))) < 8.0

    # Eval-mode (deterministic) path.
    out_det = jax.block_until_ready(fc_gaussian_forward(x, mean, logvar, training=False))
    assert bool(jnp.allclose(out_det, ref_mean, atol=2e-2, rtol=2e-2))

    # ---- Case 2: non-aligned small shapes (exercises zero-padding / full-dim blocks) --
    B2, in2, out2f = 10, 72, 40
    mean2, logvar2 = init_fc_gaussian_params(k_w2, in2, out2f)
    x_s = jax.random.normal(k_x2, (B2, in2), jnp.float32)

    o_sa = jax.block_until_ready(fc_gaussian_forward(x_s, mean2, logvar2, k_e3, training=True))
    o_sb = jax.block_until_ready(fc_gaussian_forward(x_s, mean2, logvar2, k_e3, training=True))
    assert o_sa.shape == (B2, out2f)
    assert bool(jnp.all(jnp.isfinite(o_sa)))
    assert bool(jnp.array_equal(o_sa, o_sb))

    det_s = jax.block_until_ready(fc_gaussian_forward(x_s, mean2, logvar2, training=False))
    ref_s = jnp.dot(x_s.astype(bf16), mean2.T.astype(bf16),
                    preferred_element_type=jnp.float32)
    assert bool(jnp.allclose(det_s, ref_s, atol=2e-2, rtol=2e-2))

    print("KERNEL_OK")
</pallas_src>

<mosaic_0001>
module attributes {stable_mosaic.version = 11 : i64} {
  func.func @_fc_gaussian_train_kernel(%arg0: i32, %arg1: i32, %arg2: i32, %arg3: memref<16x256xf32, #tpu.memory_space<vmem>>, %arg4: memref<256x256xbf16, #tpu.memory_space<vmem>>, %arg5: memref<256x256xbf16, #tpu.memory_space<vmem>>, %arg6: memref<16x256xf32, #tpu.memory_space<vmem>>, %arg7: memref<16x256xf32, #tpu.memory_space<vmem>>, %arg8: memref<16x256xf32, #tpu.memory_space<vmem>>, %arg9: memref<16x256xf32, #tpu.memory_space<vmem>>) attributes {dimension_semantics = [#tpu.dimension_semantics<parallel>, #tpu.dimension_semantics<parallel>, #tpu.dimension_semantics<arbitrary>], iteration_bounds = array<i64: 1, 1, 1>, scalar_prefetch = 0 : i64, scratch_operands = 2 : i64, tpu.core_type = #tpu.core_type<tc>, window_params = [{transform_indices = @transform_0, window_bounds = array<i64: 16, 256>}, {transform_indices = @transform_1, window_bounds = array<i64: 256, 256>}, {transform_indices = @transform_2, window_bounds = array<i64: 256, 256>}, {transform_indices = @transform_3, window_bounds = array<i64: 16, 256>}, {transform_indices = @transform_4, window_bounds = array<i64: 16, 256>}]} {
    %c0_i32 = arith.constant 0 : i32
    %0 = arith.cmpi eq, %arg2, %c0_i32 : i32
    %1 = arith.extui %0 : i1 to i32
    %c0_i32_0 = arith.constant 0 : i32
    %2 = arith.cmpi ne, %1, %c0_i32_0 : i32
    scf.if %2 {
      %cst_17 = arith.constant 0.000000e+00 : f32
      %20 = vector.broadcast %cst_17 : f32 to vector<16x256xf32>
      %c0_18 = arith.constant 0 : index
      %c0_19 = arith.constant 0 : index
      %21 = vector.load %arg8[%c0_18, %c0_19] : memref<16x256xf32, #tpu.memory_space<vmem>>, vector<16x256xf32>
      tpu.vector_store %arg8[%c0_18, %c0_19], %20 {strides = array<i32>} : memref<16x256xf32, #tpu.memory_space<vmem>>, vector<16x256xf32>,
      %cst_20 = arith.constant 0.000000e+00 : f32
      %22 = vector.broadcast %cst_20 : f32 to vector<16x256xf32>
      %c0_21 = arith.constant 0 : index
      %c0_22 = arith.constant 0 : index
      %23 = vector.load %arg9[%c0_21, %c0_22] : memref<16x256xf32, #tpu.memory_space<vmem>>, vector<16x256xf32>
      tpu.vector_store %arg9[%c0_21, %c0_22], %22 {strides = array<i32>} : memref<16x256xf32, #tpu.memory_space<vmem>>, vector<16x256xf32>,
    } else {
    }
    %c0 = arith.constant 0 : index
    %c0_1 = arith.constant 0 : index
    %3 = vector.load %arg3[%c0, %c0_1] : memref<16x256xf32, #tpu.memory_space<vmem>>, vector<16x256xf32>
    %4 = arith.truncf %3 : vector<16x256xf32> to vector<16x256xbf16>
    %5 = arith.mulf %3, %3 : vector<16x256xf32>
    %6 = arith.truncf %5 : vector<16x256xf32> to vector<16x256xbf16>
    %c0_2 = arith.constant 0 : index
    %c0_3 = arith.constant 0 : index
    %7 = vector.load %arg8[%c0_2, %c0_3] : memref<16x256xf32, #tpu.memory_space<vmem>>, vector<16x256xf32>
    %c0_4 = arith.constant 0 : index
    %c0_5 = arith.constant 0 : index
    %8 = vector.load %arg4[%c0_4, %c0_5] : memref<256x256xbf16, #tpu.memory_space<vmem>>, vector<256x256xbf16>
    %cst = arith.constant dense<0.000000e+00> : vector<16x256xf32>
    %9 = tpu.matmul %4, %8, %cst {dimension_numbers = #tpu.dot_dimension_numbers<[1], [0], [0], [1], [0, 0, 1, 1], [], []>} : vector<16x256xbf16>, vector<256x256xbf16>, vector<16x256xf32> -> vector<16x256xf32>
    %10 = arith.addf %7, %9 : vector<16x256xf32>
    %c0_6 = arith.constant 0 : index
    %c0_7 = arith.constant 0 : index
    %11 = vector.load %arg8[%c0_6, %c0_7] : memref<16x256xf32, #tpu.memory_space<vmem>>, vector<16x256xf32>
    tpu.vector_store %arg8[%c0_6, %c0_7], %10 {strides = array<i32>} : memref<16x256xf32, #tpu.memory_space<vmem>>, vector<16x256xf32>,
    %c0_8 = arith.constant 0 : index
    %c0_9 = arith.constant 0 : index
    %12 = vector.load %arg9[%c0_8, %c0_9] : memref<16x256xf32, #tpu.memory_space<vmem>>, vector<16x256xf32>
    %c0_10 = arith.constant 0 : index
    %c0_11 = arith.constant 0 : index
    %13 = vector.load %arg5[%c0_10, %c0_11] : memref<256x256xbf16, #tpu.memory_space<vmem>>, vector<256x256xbf16>
    %cst_12 = arith.constant dense<0.000000e+00> : vector<16x256xf32>
    %14 = tpu.matmul %6, %13, %cst_12 {dimension_numbers = #tpu.dot_dimension_numbers<[1], [0], [0], [1], [0, 0, 1, 1], [], []>} : vector<16x256xbf16>, vector<256x256xbf16>, vector<16x256xf32> -> vector<16x256xf32>
    %15 = arith.addf %12, %14 : vector<16x256xf32>
    %c0_13 = arith.constant 0 : index
    %c0_14 = arith.constant 0 : index
    %16 = vector.load %arg9[%c0_13, %c0_14] : memref<16x256xf32, #tpu.memory_space<vmem>>, vector<16x256xf32>
    tpu.vector_store %arg9[%c0_13, %c0_14], %15 {strides = array<i32>} : memref<16x256xf32, #tpu.memory_space<vmem>>, vector<16x256xf32>,
    %c0_i32_15 = arith.constant 0 : i32
    %17 = arith.cmpi eq, %arg2, %c0_i32_15 : i32
    %18 = arith.extui %17 : i1 to i32
    %c0_i32_16 = arith.constant 0 : i32
    %19 = arith.cmpi ne, %18, %c0_i32_16 : i32
    scf.if %19 {
      %c0_17 = arith.constant 0 : index
      %c0_18 = arith.constant 0 : index
      %20 = vector.load %arg8[%c0_17, %c0_18] : memref<16x256xf32, #tpu.memory_space<vmem>>, vector<16x256xf32>
      %c0_19 = arith.constant 0 : index
      %c0_20 = arith.constant 0 : index
      %21 = vector.load %arg9[%c0_19, %c0_20] : memref<16x256xf32, #tpu.memory_space<vmem>>, vector<16x256xf32>
      %22 = math.sqrt %21 : vector<16x256xf32>
      %c0_21 = arith.constant 0 : index
      %c0_22 = arith.constant 0 : index
      %23 = vector.load %arg6[%c0_21, %c0_22] : memref<16x256xf32, #tpu.memory_space<vmem>>, vector<16x256xf32>
      %24 = arith.mulf %22, %23 : vector<16x256xf32>
      %25 = arith.addf %20, %24 : vector<16x256xf32>
      %c0_23 = arith.constant 0 : index
      %c0_24 = arith.constant 0 : index
      %26 = vector.load %arg7[%c0_23, %c0_24] : memref<16x256xf32, #tpu.memory_space<vmem>>, vector<16x256xf32>
      tpu.vector_store %arg7[%c0_23, %c0_24], %25 {strides = array<i32>} : memref<16x256xf32, #tpu.memory_space<vmem>>, vector<16x256xf32>,
    } else {
    }
    return
  }
  func.func @transform_0(%arg0: i32, %arg1: i32, %arg2: i32) -> (i32, i32) {
    %c0_i32 = arith.constant 0 : i32
    return %arg0, %arg2 : i32, i32
  }
  func.func @transform_1(%arg0: i32, %arg1: i32, %arg2: i32) -> (i32, i32) {
    %c0_i32 = arith.constant 0 : i32
    return %arg2, %arg1 : i32, i32
  }
  func.func @transform_2(%arg0: i32, %arg1: i32, %arg2: i32) -> (i32, i32) {
    %c0_i32 = arith.constant 0 : i32
    return %arg2, %arg1 : i32, i32
  }
  func.func @transform_3(%arg0: i32, %arg1: i32, %arg2: i32) -> (i32, i32) {
    %c0_i32 = arith.constant 0 : i32
    return %arg0, %arg1 : i32, i32
  }
  func.func @transform_4(%arg0: i32, %arg1: i32, %arg2: i32) -> (i32, i32) {
    %c0_i32 = arith.constant 0 : i32
    return %arg0, %arg1 : i32, i32
  }
}

</mosaic_0001>

<bundles_post_ra>
// kernel: fc_gaussian_forward.1
= control target key start
LH: loop header
LB: loop body
LE: loop exit
PB: predicated region body
PF: predicated region fallthrough
CT: control target
= control target key end

     0   :  { %s1059_s0 = inlined_call_operand.vmem [shape: f32[16,256], index: 0, kind: input, shape index: {}]   ;;  %s1060_s1 = inlined_call_operand.vmem [shape: bf16[256,256], index: 1, kind: input, shape index: {}]   ;;  %s1061_s2 = inlined_call_operand.vmem [shape: bf16[256,256], index: 2, kind: input, shape index: {}]   ;;  %s1062_s3 = inlined_call_operand.vmem [shape: f32[16,256], index: 3, kind: input, shape index: {}]   ;;  %s1063_s4 = inlined_call_operand.hbm [shape: f32[16,256], index: 4, kind: output, shape index: {}]  }
   0x1   :  { %v674_v0 = vld [vmem:[%s1061_s2 + $0x4] ss:$8 sps:$4 sm:$0xff]   ;;  %v676_v1 = vld [vmem:[%s1061_s2] ss:$8 sps:$4 sm:$0xff]   ;;  %v677_v2 = vld [vmem:[%s1061_s2 + $0x14] ss:$8 sps:$4 sm:$0xff]  }
   0x2   :  { %485 = vmatprep.subr.bf16.mxu1 %v674_v0  ;;  %v679_v3 = vld [vmem:[%s1061_s2 + $0x10] ss:$8 sps:$4 sm:$0xff]   ;;  %v680_v4 = vld [vmem:[%s1061_s2 + $0x24] ss:$8 sps:$4 sm:$0xff]   ;;  %v688_v6 = vld [vmem:[%s1060_s1] ss:$8 sps:$4 sm:$0xff]  }
   0x3   :  { %486 = vmatpush1.bf16.msra.mxu1 %v676_v1  ;;  %v686_v5 = vld [vmem:[%s1060_s1 + $0x4] ss:$8 sps:$4 sm:$0xff]   ;;  %v682_v7 = vld [vmem:[%s1061_s2 + $0x20] ss:$8 sps:$4 sm:$0xff]   ;;  %v683_v8 = vld [vmem:[%s1061_s2 + $0x34] ss:$8 sps:$4 sm:$0xff]  }
   0x4   :  { %487 = vmatprep.subr.bf16.mxu1 %v677_v2  ;;  %238 = vmatprep.subr.bf16.mxu0 %v686_v5  ;;  %v692_v9 = vld [vmem:[%s1060_s1 + $0x14] ss:$8 sps:$4 sm:$0xff]   ;;  %v694_v10 = vld [vmem:[%s1060_s1 + $0x10] ss:$8 sps:$4 sm:$0xff]   ;;  %v698_v12 = vld [vmem:[%s1060_s1 + $0x24] ss:$8 sps:$4 sm:$0xff]  }
   0x5   :  { %239 = vmatpush1.bf16.msra.mxu0 %v688_v6  ;;  %v685_v11 = vld [vmem:[%s1061_s2 + $0x30] ss:$8 sps:$4 sm:$0xff]   ;;  %v689_v13 = vld [vmem:[%s1061_s2 + $0x44] ss:$8 sps:$4 sm:$0xff]   ;;  %v700_v14 = vld [vmem:[%s1060_s1 + $0x20] ss:$8 sps:$4 sm:$0xff]  }
   0x6   :  { %240 = vmatprep.subr.bf16.mxu0 %v692_v9  ;;  %v704_v15 = vld [vmem:[%s1060_s1 + $0x34] ss:$8 sps:$4 sm:$0xff]   ;;  %v691_v16 = vld [vmem:[%s1061_s2 + $0x40] ss:$8 sps:$4 sm:$0xff]   ;;  %v706_v18 = vld [vmem:[%s1060_s1 + $0x30] ss:$8 sps:$4 sm:$0xff]  }
   0x7   :  { %488 = vmatpush1.bf16.msra.mxu1 %v679_v3  ;;  %v695_v17 = vld [vmem:[%s1061_s2 + $0x54] ss:$8 sps:$4 sm:$0xff]   ;;  %v710_v19 = vld [vmem:[%s1060_s1 + $0x44] ss:$8 sps:$4 sm:$0xff]   ;;  %v697_v20 = vld [vmem:[%s1061_s2 + $0x50] ss:$8 sps:$4 sm:$0xff]  }
   0x8   :  { %489 = vmatprep.subr.bf16.mxu1 %v680_v4  ;;  %v701_v21 = vld [vmem:[%s1061_s2 + $0x64] ss:$8 sps:$4 sm:$0xff]   ;;  %v712_v22 = vld [vmem:[%s1060_s1 + $0x40] ss:$8 sps:$4 sm:$0xff]   ;;  %v716_v23 = vld [vmem:[%s1060_s1 + $0x54] ss:$8 sps:$4 sm:$0xff]  }
   0x9   :  { %241 = vmatpush1.bf16.msra.mxu0 %v694_v10  ;;  %v703_v24 = vld [vmem:[%s1061_s2 + $0x60] ss:$8 sps:$4 sm:$0xff]   ;;  %v707_v25 = vld [vmem:[%s1061_s2 + $0x74] ss:$8 sps:$4 sm:$0xff]   ;;  %v718_v26 = vld [vmem:[%s1060_s1 + $0x50] ss:$8 sps:$4 sm:$0xff]  }
   0xa   :  { %242 = vmatprep.subr.bf16.mxu0 %v698_v12  ;;  %v722_v27 = vld [vmem:[%s1060_s1 + $0x64] ss:$8 sps:$4 sm:$0xff]   ;;  %v709_v28 = vld [vmem:[%s1061_s2 + $0x70] ss:$8 sps:$4 sm:$0xff]   ;;  %v724_v30 = vld [vmem:[%s1060_s1 + $0x60] ss:$8 sps:$4 sm:$0xff]  }
   0xb   :  { %490 = vmatpush1.bf16.msra.mxu1 %v682_v7  ;;  %v713_v29 = vld [vmem:[%s1061_s2 + $0x84] ss:$8 sps:$4 sm:$0xff]   ;;  %v728_v31 = vld [vmem:[%s1060_s1 + $0x74] ss:$8 sps:$4 sm:$0xff]   ;;  %v715_v32 = vld [vmem:[%s1061_s2 + $0x80] ss:$8 sps:$4 sm:$0xff]  }
   0xc   :  { %491 = vmatprep.subr.bf16.mxu1 %v683_v8  ;;  %v719_v33 = vld [vmem:[%s1061_s2 + $0x94] ss:$8 sps:$4 sm:$0xff]   ;;  %v730_v34 = vld [vmem:[%s1060_s1 + $0x70] ss:$8 sps:$4 sm:$0xff]   ;;  %v734_v35 = vld [vmem:[%s1060_s1 + $0x84] ss:$8 sps:$4 sm:$0xff]  }
   0xd   :  { %243 = vmatpush1.bf16.msra.mxu0 %v700_v14  ;;  %v721_v36 = vld [vmem:[%s1061_s2 + $0x90] ss:$8 sps:$4 sm:$0xff]   ;;  %v725_v37 = vld [vmem:[%s1061_s2 + $0xa4] ss:$8 sps:$4 sm:$0xff]   ;;  %v736_v38 = vld [vmem:[%s1060_s1 + $0x80] ss:$8 sps:$4 sm:$0xff]  }
   0xe   :  { %244 = vmatprep.subr.bf16.mxu0 %v704_v15  ;;  %v740_v39 = vld [vmem:[%s1060_s1 + $0x94] ss:$8 sps:$4 sm:$0xff]   ;;  %v31_v40 = vld [vmem:[%s1059_s0 + $0x8] sm:$0xff]  ;;  %v742_v47 = vld [vmem:[%s1060_s1 + $0x90] ss:$8 sps:$4 sm:$0xff]  }
   0xf   :  { %492 = vmatpush1.bf16.msra.mxu1 %v685_v11  ;;  %v727_v41 = vld [vmem:[%s1061_s2 + $0xa0] ss:$8 sps:$4 sm:$0xff]   ;;  %v33_v42 = vld [vmem:[%s1059_s0 + $0x18] sm:$0xff]  ;;  %v37_v43 = vmul.f32 %v31_v40, %v31_v40  ;;  %v746_v48 = vld [vmem:[%s1060_s1 + $0xa4] ss:$8 sps:$4 sm:$0xff]  }
  0x10   :  { %493 = vmatprep.subr.bf16.mxu1 %v689_v13  ;;  %v731_v44 = vld [vmem:[%s1061_s2 + $0xb4] ss:$8 sps:$4 sm:$0xff]   ;;  %v39_v45 = vmul.f32 %v33_v42, %v33_v42  ;;  %v35_v46 = vpack.c.bf16 %v33_v42, %v31_v40  ;;  %v733_v50 = vld [vmem:[%s1061_s2 + $0xb0] ss:$8 sps:$4 sm:$0xff]   ;;  %v737_v51 = vld [vmem:[%s1061_s2 + $0xc4] ss:$8 sps:$4 sm:$0xff]  }
  0x11   :  { %245 = vmatpush1.bf16.msra.mxu0 %v706_v18 }
  0x12   :  { %246 = vmatprep.subr.bf16.mxu0 %v710_v19  ;;  %v41_v49 = vpack.c.bf16 %v39_v45, %v37_v43  ;;  %270 = vmatprep.mubr.bf16.mxu0 %v35_v46 }
  0x13   :  { %494 = vmatpush1.bf16.msra.mxu1 %v691_v16 }
  0x14   :  { %495 = vmatprep.subr.bf16.mxu1 %v695_v17  ;;  %517 = vmatprep.mubr.bf16.mxu1 %v41_v49 }
  0x15   :  { %247 = vmatpush1.bf16.msra.mxu0 %v712_v22 }
  0x16   :  { %248 = vmatprep.subr.bf16.mxu0 %v716_v23 }
  0x17   :  { %496 = vmatpush1.bf16.msra.mxu1 %v697_v20 }
  0x18   :  { %497 = vmatprep.subr.bf16.mxu1 %v701_v21 }
  0x19   :  { %249 = vmatpush1.bf16.msra.mxu0 %v718_v26 }
  0x1a   :  { %250 = vmatprep.subr.bf16.mxu0 %v722_v27 }
  0x1b   :  { %498 = vmatpush1.bf16.msra.mxu1 %v703_v24 }
  0x1c   :  { %499 = vmatprep.subr.bf16.mxu1 %v707_v25 }
  0x1d   :  { %251 = vmatpush1.bf16.msra.mxu0 %v724_v30 }
  0x1e   :  { %252 = vmatprep.subr.bf16.mxu0 %v728_v31 }
  0x1f   :  { %500 = vmatpush1.bf16.msra.mxu1 %v709_v28 }
  0x20   :  { %501 = vmatprep.subr.bf16.mxu1 %v713_v29 }
  0x21   :  { %253 = vmatpush1.bf16.msra.mxu0 %v730_v34 }
  0x22   :  { %254 = vmatprep.subr.bf16.mxu0 %v734_v35 }
  0x23   :  { %502 = vmatpush1.bf16.msra.mxu1 %v715_v32 }
  0x24   :  { %503 = vmatprep.subr.bf16.mxu1 %v719_v33 }
  0x25   :  { %255 = vmatpush1.bf16.msra.mxu0 %v736_v38 }
  0x26   :  { %256 = vmatprep.subr.bf16.mxu0 %v740_v39 }
  0x27   :  { %504 = vmatpush1.bf16.msra.mxu1 %v721_v36 }
  0x28   :  { %505 = vmatprep.subr.bf16.mxu1 %v725_v37 }
  0x2b   :  { %506 = vmatpush1.bf16.msra.mxu1 %v727_v41 }
  0x2c   :  { %507 = vmatprep.subr.bf16.mxu1 %v731_v44 }
  0x2d   :  { %9 = vsyncpa [#allocation5], 0  ;;  %257 = vmatpush1.bf16.msra.mxu0 %v742_v47  ;;  %v748_v52 = vld [vmem:[%s1060_s1 + $0xa0] ss:$8 sps:$4 sm:$0xff]   ;;  %v752_v53 = vld [vmem:[%s1060_s1 + $0xb4] ss:$8 sps:$4 sm:$0xff]  }
  0x2e   :  { %258 = vmatprep.subr.bf16.mxu0 %v746_v48  ;;  %v739_v54 = vld [vmem:[%s1061_s2 + $0xc0] ss:$8 sps:$4 sm:$0xff]   ;;  %v743_v55 = vld [vmem:[%s1061_s2 + $0xd4] ss:$8 sps:$4 sm:$0xff]   ;;  %v754_v56 = vld [vmem:[%s1060_s1 + $0xb0] ss:$8 sps:$4 sm:$0xff]  }
  0x2f   :  { %508 = vmatpush1.bf16.msra.mxu1 %v733_v50  ;;  %v758_v57 = vld [vmem:[%s1060_s1 + $0xc4] ss:$8 sps:$4 sm:$0xff]   ;;  %v745_v58 = vld [vmem:[%s1061_s2 + $0xd0] ss:$8 sps:$4 sm:$0xff]   ;;  %v760_v60 = vld [vmem:[%s1060_s1 + $0xc0] ss:$8 sps:$4 sm:$0xff]  }
  0x30   :  { %509 = vmatprep.subr.bf16.mxu1 %v737_v51  ;;  %v749_v59 = vld [vmem:[%s1061_s2 + $0xe4] ss:$8 sps:$4 sm:$0xff]   ;;  %v761_v61 = vld [vmem:[%s1060_s1 + $0xd4] ss:$8 sps:$4 sm:$0xff]   ;;  %v751_v62 = vld [vmem:[%s1061_s2 + $0xe0] ss:$8 sps:$4 sm:$0xff]  }
  0x31   :  { %259 = vmatpush1.bf16.msra.mxu0 %v748_v52  ;;  %v30_v63 = vld [vmem:[%s1059_s0] sm:$0xff]  ;;  %v32_v0 = vld [vmem:[%s1059_s0 + $0x10] sm:$0xff]  ;;  %v576_v30 = vld [vmem:[%s1062_s3 + $0x8] sm:$0xff]  ;;  %s802_s26 = smov [#allocation4]  }
  0x32   :  { %260 = vmatprep.subr.bf16.mxu0 %v752_v53  ;;  %v755_v1 = vld [vmem:[%s1061_s2 + $0xf4] ss:$8 sps:$4 sm:$0xff]   ;;  %v763_v2 = vld [vmem:[%s1060_s1 + $0xd0] ss:$8 sps:$4 sm:$0xff]   ;;  %v36_v3 = vmul.f32 %v30_v63, %v30_v63  ;;  %v38_v4 = vmul.f32 %v32_v0, %v32_v0  ;;  %v764_v5 = vld [vmem:[%s1060_s1 + $0xe4] ss:$8 sps:$4 sm:$0xff]   ;;  %v34_v11 = vpack.c.bf16 %v32_v0, %v30_v63 }
  0x33   :  { %510 = vmatpush1.bf16.msra.mxu1 %v739_v54  ;;  %v757_v6 = vld [vmem:[%s1061_s2 + $0xf0] ss:$8 sps:$4 sm:$0xff]   ;;  %v766_v7 = vld [vmem:[%s1060_s1 + $0xe0] ss:$8 sps:$4 sm:$0xff]   ;;  %v767_v9 = vld [vmem:[%s1060_s1 + $0xf4] ss:$8 sps:$4 sm:$0xff]  }
  0x34   :  { %511 = vmatprep.subr.bf16.mxu1 %v743_v55  ;;  %v40_v8 = vpack.c.bf16 %v38_v4, %v36_v3  ;;  %v769_v10 = vld [vmem:[%s1060_s1 + $0xf0] ss:$8 sps:$4 sm:$0xff]   ;;  %v575_v25 = vld [vmem:[%s1062_s3] sm:$0xff]  ;;  %s596_s27 = sshll.u32 %s802_s26, 4  ;;  %s597_s27 = int_to_ptr.vmem [resolvable:$true] %s596_s27 }
  0x35   :  { %261 = vmatpush1.bf16.msra.mxu0 %v754_v56  ;;  %v577_v36 = vld [vmem:[%s1062_s3 + $0x10] sm:$0xff]  ;;  %v578_v41 = vld [vmem:[%s1062_s3 + $0x18] sm:$0xff]  ;;  %s778_s28 = scalar_lea.vmem %s597_s27, 512  ;;  %p783_p1 = scmp.lt.s32.totalorder %s597_s27, %s597_s27 }
  0x36   :  { %262 = vmatprep.subr.bf16.mxu0 %v758_v57  ;;  %p779_p0 = scmp.ne.s32.totalorder %s597_s27, %s778_s28  ;;  %p784_p2 = scmp.lt.s32.totalorder %s778_s28, %s778_s28 }
  0x37   :  { %512 = vmatpush1.bf16.msra.mxu1 %v745_v58 }
  0x38   :  { %513 = vmatprep.subr.bf16.mxu1 %v749_v59  ;;  %p785_p3 = por %p784_p2, %p783_p1 }
  0x39   :  { %263 = vmatpush1.bf16.msra.mxu0 %v760_v60 }
  0x3a   :  { %264 = vmatprep.subr.bf16.mxu0 %v761_v61  ;;  %p786_p4 = pnand %p785_p3, %p779_p0 }
  0x3b   :  { %514 = vmatpush1.bf16.msra.mxu1 %v751_v62 }
  0x3c   :  { %515 = vmatprep.subr.bf16.mxu1 %v755_v1 }
  0x3d   :  { %265 = vmatpush1.bf16.msra.mxu0 %v763_v2 }
  0x3e   :  { %266 = vmatprep.subr.bf16.mxu0 %v764_v5 }
  0x3f   :  { %516 = vmatpush1.bf16.msra.mxu1 %v757_v6 }
  0x41   :  { %267 = vmatpush1.bf16.msra.mxu0 %v766_v7 }
  0x42   :  { %518 = vmatmul.mubr.bf16.vlgmr.msra.gmra.mrb[0].mxu1 %v40_v8  ;;  %268 = vmatprep.subr.bf16.mxu0 %v767_v9 }
  0x45   :  { %269 = vmatpush1.bf16.msra.mxu0 %v769_v10 }
  0x48   :  { %271 = vmatmul.mubr.bf16.vlgmr.msra.gmra.mrb[0].mxu0 %v34_v11 }
 0x115   :  { %v519_v12 = vpop.f32.mrb[0].mxu1 }
 0x116   :  { %770 = vrsqrt.f32 %v519_v12  ;;  %v521_v13 = vpop.f32.mrb[1].mxu1  ;;  %vm549_vm0 = vcmp.eq.f32.partialorder %v519_v12, inf  ;;  %vm551_vm1 = vcmp.eq.f32.partialorder %v519_v12, 0.0  ;;  %v552_v23 = vand.u32 2147483648, %v519_v12 }
 0x117   :  { %772 = vrsqrt.f32 %v521_v13  ;;  %v523_v14 = vpop.f32.mrb[2].mxu1  ;;  %vm556_vm2 = vcmp.eq.f32.partialorder %v521_v13, inf  ;;  %vm558_vm3 = vcmp.eq.f32.partialorder %v521_v13, 0.0  ;;  %v559_v27 = vand.u32 2147483648, %v521_v13 }
 0x118   :  { %774 = vrsqrt.f32 %v523_v14  ;;  %v525_v15 = vpop.f32.mrb[3].mxu1  ;;  %vm563_vm4 = vcmp.eq.f32.partialorder %v523_v14, inf  ;;  %vm565_vm5 = vcmp.eq.f32.partialorder %v523_v14, 0.0  ;;  %v566_v32 = vand.u32 2147483648, %v523_v14 }
 0x119   :  { %776 = vrsqrt.f32 %v525_v15  ;;  %vm570_vm6 = vcmp.eq.f32.partialorder %v525_v15, inf  ;;  %v573_v40 = vand.u32 2147483648, %v525_v15  ;;  %vm572_vm7 = vcmp.eq.f32.partialorder %v525_v15, 0.0 }
 0x11b   :  { %v272_v16 = vpop.f32.mrb[0].mxu0 }
 0x11c   :  { %v274_v17 = vpop.f32.mrb[1].mxu0 }
 0x11d   :  { %v276_v18 = vpop.f32.mrb[2].mxu0 }
 0x11e   :  { %v278_v19 = vpop.f32.mrb[3].mxu0 }
 0x120   :  { %v771_v20 = vpop.eup %770 }
 0x121   :  { %v773_v21 = vpop.eup %772  ;;  %v548_v22 = vmul.f32 %v771_v20, %v519_v12 }
 0x122   :  { %v775_v24 = vpop.eup %774  ;;  %v555_v26 = vmul.f32 %v773_v21, %v521_v13 }
 0x123   :  { %v777_v28 = vpop.eup %776  ;;  %v550_v29 = vsel %vm549_vm0, %v519_v12, %v548_v22  ;;  %v562_v31 = vmul.f32 %v775_v24, %v523_v14 }
 0x124   :  { %v569_v33 = vmul.f32 %v777_v28, %v525_v15  ;;  %v553_v34 = vsel %vm551_vm1, %v552_v23, %v550_v29  ;;  %v557_v35 = vsel %vm556_vm2, %v521_v13, %v555_v26 }
 0x125   :  { %v579_v37 = vmul.f32 %v575_v25, %v553_v34  ;;  %v560_v38 = vsel %vm558_vm3, %v559_v27, %v557_v35  ;;  %v564_v39 = vsel %vm563_vm4, %v523_v14, %v562_v31 }
 0x126   :  { %v580_v42 = vmul.f32 %v576_v30, %v560_v38  ;;  %v567_v43 = vsel %vm565_vm5, %v566_v32, %v564_v39  ;;  %v571_v44 = vsel %vm570_vm6, %v525_v15, %v569_v33 }
 0x127   :  { %v583_v45 = vadd.f32 %v579_v37, %v272_v16  ;;  %v581_v46 = vmul.f32 %v577_v36, %v567_v43  ;;  %v574_v47 = vsel %vm572_vm7, %v573_v40, %v571_v44 }
 0x128   :  { %v584_v48 = vadd.f32 %v580_v42, %v274_v17  ;;  %v582_v49 = vmul.f32 %v578_v41, %v574_v47 }
 0x129   :  { %587 = vst [vmem:[#allocation4] sm:$0xff] %v583_v45  ;;  %v585_v50 = vadd.f32 %v581_v46, %v276_v18 }
 0x12a   :  { %588 = vst [vmem:[#allocation4 + $0x8] sm:$0xff] %v584_v48  ;;  %v586_v51 = vadd.f32 %v582_v49, %v278_v19 }
 0x12b   :  { %589 = vst [vmem:[#allocation4 + $0x10] sm:$0xff] %v585_v50 }
 0x12c   :  { %590 = vst [vmem:[#allocation4 + $0x18] sm:$0xff] %v586_v51 }
 0x12d   :  { %789 = shalt.err (!%p786_p4)
}
 0x12e   :  { %s790_s30 = scalar_lea.hbm %s1063_s4, 512 }
 0x12f   :  { %p791_p5 = scmp.ne.s32.totalorder %s1063_s4, %s790_s30  ;;  %p794_p6 = scmp.lt.u32.totalorder %s790_s30, %s1063_s4 }
 0x131   :  { %p796_p7 = pnand %p794_p6, %p791_p5 }
 0x133   :  { %799 = shalt.err (!%p796_p7)
}
 0x134   :  { %s803_s9 = smov 256   ;;  %s804_s10 = smov 16  }
 0x135   :  { %602 = dma.vmem_to_hbm [thread:$0]  %s597_s27, 512, %s1063_s4, [#allocation5], %s803_s9, %s803_s9, %s804_s10  }
 0x136   :  { %800 = dma.done.wait [#allocation5], 512  }
 0x137   :  { %801 = vsyncadd [#allocation5], 4294966784 }
 0x138   :  { %606 = vsyncpa [#allocation5], 1 }

</bundles_post_ra>
